<compile_context>
chip_gen: v7x
topology: tpu7x:2x2x1
jax: 0.10.0
libtpu: 0.0.40
codegen_flags: <defaults>
</compile_context>

<pallas_src>
import jax
import jax.numpy as jnp
from jax.experimental import pallas as pl
from jax.experimental.pallas import tpu as pltpu


_LANE_GROUP = 8                         # rows packed into the lane dim per group
_REP_WEIGHT_BUDGET = 4 * 1024 * 1024    # replicate fused weights only if tiny
_VMEM_STEP_BUDGET = 12 * 1024 * 1024    # double-buffered activation tiles


def _sum_mlp_kernel(x_ref, w1_ref, b1_ref, w2_ref, b2_ref, o_ref):
    # Fused SumNetwork forward on one batch tile (2 MXU pushes, f32 accumulate).
    x = x_ref[...].astype(w1_ref.dtype)
    h = jnp.dot(x, w1_ref[...], preferred_element_type=jnp.float32)
    h = jnp.tanh(h + b1_ref[...])                       # f32 bias + tanh (VPU/EUP)
    y = jnp.dot(h.astype(w2_ref.dtype), w2_ref[...],
                preferred_element_type=jnp.float32)
    o_ref[...] = (y + b2_ref[...]).astype(o_ref.dtype)


def _fuse_params(pos_params, mom_params, compute_dtype):
    """Fold the two branches into one MLP: block-diag W1, stacked W2, summed b2."""
    w1p, b1p, w2p, b2p = pos_params
    w1m, b1m, w2m, b2m = mom_params
    d, H = w1p.shape
    out_dim = w2p.shape[1]
    w1 = jnp.zeros((2 * d, 2 * H), jnp.float32)
    w1 = w1.at[:d, :H].set(w1p).at[d:, H:].set(w1m)     # x[:, :d]->pos, x[:, d:]->mom
    b1 = jnp.concatenate([b1p.reshape(1, H), b1m.reshape(1, H)], axis=-1)
    w2 = jnp.concatenate([w2p, w2m], axis=0)            # [hp|hm] @ [W2p; W2m]
    b2 = (b2p + b2m).reshape(1, out_dim)
    return w1.astype(compute_dtype), b1, w2.astype(compute_dtype), b2


def sum_network(x, params, *, block_b=8192, compute_dtype=None):
    """SumNetwork forward: position_net(x[:, :d]) + momentum_net(x[:, d:]).

    x: (B, 2d).  params = ((w1p, b1p, w2p, b2p), (w1m, b1m, w2m, b2m)).
    """
    B, D = x.shape
    assert D % 2 == 0, "last dim must be even for torch.chunk(x, 2, dim=-1)"
    pos_params, mom_params = params
    d, H = pos_params[0].shape
    out_dim = pos_params[2].shape[1]
    assert 2 * d == D

    out_dtype = x.dtype
    cdt = out_dtype if compute_dtype is None else compute_dtype
    w1, b1, w2, b2 = _fuse_params(pos_params, mom_params, cdt)

    # Lane-dense repacking: view x as (B/R, R*D) (free bitcast) and replicate the
    # fused weights block-diagonally R times so the output tile is (rows, R*out_dim).
    R = _LANE_GROUP
    wsize = jnp.dtype(cdt).itemsize
    rep_bytes = (R * D) * (R * 2 * H) * wsize + (R * 2 * H) * (R * out_dim) * wsize
    lane_dense = (
        B % R == 0
        and rep_bytes <= _REP_WEIGHT_BUDGET
        and (D % 128 != 0 or out_dim % 128 != 0)   # skip if already lane-dense
    )

    if lane_dense:
        eye = jnp.eye(R, dtype=cdt)
        w1 = jnp.kron(eye, w1)                     # (R*D, R*2H), block-diagonal
        w2 = jnp.kron(eye, w2)                     # (R*2H, R*out_dim)
        b1 = jnp.tile(b1, (1, R))
        b2 = jnp.tile(b2, (1, R))
        x_in = x.reshape(B // R, R * D)            # row-major bitcast, no HBM pass
        rows, in_w, out_w = B // R, R * D, R * out_dim
    else:
        x_in = x
        rows, in_w, out_w = B, D, out_dim

    # Row tiling: single tile if it all fits in one block, else multiples of the
    # sublane quantum (8 rows for 4-byte, 16 for 2-byte activations).
    act_isz = min(x.dtype.itemsize, jnp.dtype(out_dtype).itemsize)
    quantum = 32 // act_isz
    cap = max(block_b // (R if lane_dense else 1), quantum)
    if rows <= cap:
        tr = rows                                  # block shape == full array dims
    else:
        tr = max((cap // quantum) * quantum, quantum)

        def step_bytes(t):                         # double-buffered activation tiles
            return 2 * (t * in_w * x.dtype.itemsize
                        + t * out_w * jnp.dtype(out_dtype).itemsize)

        while tr > quantum and step_bytes(tr) > _VMEM_STEP_BUDGET:
            tr = max(((tr // 2) // quantum) * quantum, quantum)

    grid = (pl.cdiv(rows, tr),)

    def resident(shape):
        # Same block index every step -> tiny fused weights stay resident in VMEM.
        return pl.BlockSpec(shape, lambda i: (0, 0))

    out = pl.pallas_call(
        _sum_mlp_kernel,
        out_shape=jax.ShapeDtypeStruct((rows, out_w), out_dtype),
        grid=grid,
        in_specs=[
            pl.BlockSpec((tr, in_w), lambda i: (i, 0)),   # x tile (pipelined)
            resident(w1.shape),                           # fused W1
            resident(b1.shape),                           # fused b1
            resident(w2.shape),                           # fused W2
            resident(b2.shape),                           # fused b2
        ],
        out_specs=pl.BlockSpec((tr, out_w), lambda i: (i, 0)),
        compiler_params=pltpu.CompilerParams(
            dimension_semantics=("parallel",),            # shard batch across TCs
            vmem_limit_bytes=32 * 1024 * 1024,
        ),
    )(x_in, w1, b1, w2, b2)

    return out.reshape(B, out_dim)   # bitcast when lane_dense, identity otherwise


def _init_mlp_params(key, d_in, hidden, d_out):
    k1, k2, k3, k4 = jax.random.split(key, 4)
    w1 = jax.random.normal(k1, (d_in, hidden), jnp.float32) * 0.1
    b1 = jax.random.normal(k2, (1, hidden), jnp.float32) * 0.1
    w2 = jax.random.normal(k3, (hidden, d_out), jnp.float32) * 0.1
    b2 = jax.random.normal(k4, (1, d_out), jnp.float32) * 0.1
    return (w1, b1, w2, b2)


def _mlp_ref(x, params):
    w1, b1, w2, b2 = params
    return jnp.tanh(x @ w1 + b1) @ w2 + b2


if __name__ == "__main__":
    key = jax.random.PRNGKey(0)
    k_x, k_pos, k_mom = jax.random.split(key, 3)

    d, H = 16, 32                       # x last dim 2*d = 32, out_dim = d = 16
    pos_params = _init_mlp_params(k_pos, d, H, d)
    mom_params = _init_mlp_params(k_mom, d, H, d)
    params = (pos_params, mom_params)

    def ref_fn(x):                      # pure-JAX reference of SumNetwork.forward
        return _mlp_ref(x[:, :d], pos_params) + _mlp_ref(x[:, d:], mom_params)

    # 1) Primary lane-dense path, single tile.
    x1 = jax.random.normal(k_x, (64, 2 * d), jnp.float32)
    o1 = jax.block_until_ready(sum_network(x1, params))
    assert o1.shape == (64, d)
    assert jnp.allclose(o1, ref_fn(x1), atol=1e-4, rtol=1e-4), "lane-dense mismatch"

    # 2) Lane-dense, multi-tile grid with a ragged last block (no pad / no slice).
    x2 = jax.random.normal(jax.random.fold_in(k_x, 1), (200, 2 * d), jnp.float32)
    o2 = jax.block_until_ready(sum_network(x2, params, block_b=64))
    assert jnp.allclose(o2, ref_fn(x2), atol=1e-4, rtol=1e-4), "ragged mismatch"

    # 3) Fallback narrow layout (B not a multiple of 8), multi-tile + ragged block.
    x3 = jax.random.normal(jax.random.fold_in(k_x, 2), (10, 2 * d), jnp.float32)
    o3 = jax.block_until_ready(sum_network(x3, params, block_b=8))
    assert jnp.allclose(o3, ref_fn(x3), atol=1e-4, rtol=1e-4), "fallback mismatch"

    print("KERNEL_OK")
</pallas_src>

<mosaic_0001>
module attributes {stable_mosaic.version = 11 : i64} {
  func.func @_sum_mlp_kernel(%arg0: i32, %arg1: memref<8x256xf32, #tpu.memory_space<vmem>>, %arg2: memref<256x512xf32, #tpu.memory_space<vmem>>, %arg3: memref<1x512xf32, #tpu.memory_space<vmem>>, %arg4: memref<512x128xf32, #tpu.memory_space<vmem>>, %arg5: memref<1x128xf32, #tpu.memory_space<vmem>>, %arg6: memref<8x128xf32, #tpu.memory_space<vmem>>) attributes {dimension_semantics = [#tpu.dimension_semantics<parallel>], iteration_bounds = array<i64: 1>, scalar_prefetch = 0 : i64, scratch_operands = 0 : i64, tpu.core_type = #tpu.core_type<tc>, window_params = [{transform_indices = @transform_0, window_bounds = array<i64: 8, 256>}, {pipeline_mode = #tpu.pipeline_mode<synchronous>, transform_indices = @transform_1, window_bounds = array<i64: 256, 512>}, {pipeline_mode = #tpu.pipeline_mode<synchronous>, transform_indices = @transform_2, window_bounds = array<i64: 1, 512>}, {pipeline_mode = #tpu.pipeline_mode<synchronous>, transform_indices = @transform_3, window_bounds = array<i64: 512, 128>}, {pipeline_mode = #tpu.pipeline_mode<synchronous>, transform_indices = @transform_4, window_bounds = array<i64: 1, 128>}, {transform_indices = @transform_5, window_bounds = array<i64: 8, 128>}]} {
    %c0 = arith.constant 0 : index
    %c0_0 = arith.constant 0 : index
    %0 = vector.load %arg1[%c0, %c0_0] : memref<8x256xf32, #tpu.memory_space<vmem>>, vector<8x256xf32>
    %c0_1 = arith.constant 0 : index
    %c0_2 = arith.constant 0 : index
    %1 = vector.load %arg2[%c0_1, %c0_2] : memref<256x512xf32, #tpu.memory_space<vmem>>, vector<256x512xf32>
    %cst = arith.constant dense<0.000000e+00> : vector<8x512xf32>
    %2 = tpu.matmul %0, %1, %cst {dimension_numbers = #tpu.dot_dimension_numbers<[1], [0], [0], [1], [0, 0, 1, 1], [], []>} : vector<8x256xf32>, vector<256x512xf32>, vector<8x512xf32> -> vector<8x512xf32>
    %c0_3 = arith.constant 0 : index
    %c0_4 = arith.constant 0 : index
    %3 = vector.load %arg3[%c0_3, %c0_4] : memref<1x512xf32, #tpu.memory_space<vmem>>, vector<1x512xf32>
    %4 = vector.broadcast %3 : vector<1x512xf32> to vector<8x512xf32>
    %5 = arith.addf %2, %4 : vector<8x512xf32>
    %6 = math.tanh %5 : vector<8x512xf32>
    %c0_5 = arith.constant 0 : index
    %c0_6 = arith.constant 0 : index
    %7 = vector.load %arg4[%c0_5, %c0_6] : memref<512x128xf32, #tpu.memory_space<vmem>>, vector<512x128xf32>
    %cst_7 = arith.constant dense<0.000000e+00> : vector<8x128xf32>
    %8 = tpu.matmul %6, %7, %cst_7 {dimension_numbers = #tpu.dot_dimension_numbers<[1], [0], [0], [1], [0, 0, 1, 1], [], []>} : vector<8x512xf32>, vector<512x128xf32>, vector<8x128xf32> -> vector<8x128xf32>
    %c0_8 = arith.constant 0 : index
    %c0_9 = arith.constant 0 : index
    %9 = vector.load %arg5[%c0_8, %c0_9] : memref<1x128xf32, #tpu.memory_space<vmem>>, vector<1x128xf32>
    %10 = vector.broadcast %9 : vector<1x128xf32> to vector<8x128xf32>
    %11 = arith.addf %8, %10 : vector<8x128xf32>
    %c0_10 = arith.constant 0 : index
    %c0_11 = arith.constant 0 : index
    %12 = vector.load %arg6[%c0_10, %c0_11] : memref<8x128xf32, #tpu.memory_space<vmem>>, vector<8x128xf32>
    tpu.vector_store %arg6[%c0_10, %c0_11], %11 {strides = array<i32>} : memref<8x128xf32, #tpu.memory_space<vmem>>, vector<8x128xf32>,
    return
  }
  func.func @transform_0(%arg0: i32) -> (i32, i32) {
    %c0_i32 = arith.constant 0 : i32
    %c0_i32_0 = arith.constant 0 : i32
    return %arg0, %c0_i32 : i32, i32
  }
  func.func @transform_1(%arg0: i32) -> (i32, i32) {
    %c0_i32 = arith.constant 0 : i32
    %c0_i32_0 = arith.constant 0 : i32
    %c0_i32_1 = arith.constant 0 : i32
    return %c0_i32, %c0_i32_0 : i32, i32
  }
  func.func @transform_2(%arg0: i32) -> (i32, i32) {
    %c0_i32 = arith.constant 0 : i32
    %c0_i32_0 = arith.constant 0 : i32
    %c0_i32_1 = arith.constant 0 : i32
    return %c0_i32, %c0_i32_0 : i32, i32
  }
  func.func @transform_3(%arg0: i32) -> (i32, i32) {
    %c0_i32 = arith.constant 0 : i32
    %c0_i32_0 = arith.constant 0 : i32
    %c0_i32_1 = arith.constant 0 : i32
    return %c0_i32, %c0_i32_0 : i32, i32
  }
  func.func @transform_4(%arg0: i32) -> (i32, i32) {
    %c0_i32 = arith.constant 0 : i32
    %c0_i32_0 = arith.constant 0 : i32
    %c0_i32_1 = arith.constant 0 : i32
    return %c0_i32, %c0_i32_0 : i32, i32
  }
  func.func @transform_5(%arg0: i32) -> (i32, i32) {
    %c0_i32 = arith.constant 0 : i32
    %c0_i32_0 = arith.constant 0 : i32
    return %arg0, %c0_i32 : i32, i32
  }
}

</mosaic_0001>

<bundles_post_ra>
// kernel: tpu_custom_call.1
= control target key start
LH: loop header
LB: loop body
LE: loop exit
PB: predicated region body
PF: predicated region fallthrough
CT: control target
= control target key end

     0   :  { %10 = vsyncpa [#allocation3], 0  ;;  %s1051_s0 = inlined_call_operand.hbm [shape: f32[8,256], index: 0, kind: input, shape index: {}]   ;;  %s1052_s1 = inlined_call_operand.hbm [shape: f32[256,512], index: 1, kind: input, shape index: {}]   ;;  %s1053_s2 = inlined_call_operand.vmem [shape: f32[1,512], index: 2, kind: input, shape index: {}]   ;;  %s1054_s3 = inlined_call_operand.hbm [shape: f32[512,128], index: 3, kind: input, shape index: {}]   ;;  %s1055_s4 = inlined_call_operand.vmem [shape: f32[1,128], index: 4, kind: input, shape index: {}]   ;;  %s1056_s5 = inlined_call_operand.hbm [shape: f32[8,128], index: 5, kind: output, shape index: {}]  }
   0x1   :  { %11 = vsyncpa [#allocation6], 0 }
   0x2   :  { %12 = vsyncpa [#allocation4], 0  ;;  %s959_s18 = smov [#allocation5]   ;;  %s865_s22 = scalar_lea.hbm %s1052_s1, 16384 }
   0x3   :  { %s28_s19 = sshll.u32 %s959_s18, 4  ;;  %p866_p0 = scmp.ne.s32.totalorder %s1052_s1, %s865_s22  ;;  %s29_s19 = int_to_ptr.vmem [resolvable:$true] %s28_s19 }
   0x4   :  { %p869_p1 = scmp.lt.u32.totalorder %s865_s22, %s1052_s1 }
   0x6   :  { %p871_p2 = pnand %p869_p1, %p866_p0 }
   0x8   :  { %874 = shalt.err (!%p871_p2)
}
   0x9   :  { %s875_s27 = scalar_lea.vmem %s29_s19, 16384  ;;  %p880_p4 = scmp.lt.s32.totalorder %s29_s19, %s29_s19 }
   0xa   :  { %p876_p3 = scmp.ne.s32.totalorder %s29_s19, %s875_s27  ;;  %p881_p5 = scmp.lt.s32.totalorder %s875_s27, %s875_s27 }
   0xc   :  { %p882_p6 = por %p881_p5, %p880_p4 }
   0xe   :  { %p883_p7 = pnand %p882_p6, %p876_p3 }
  0x10   :  { %886 = shalt.err (!%p883_p7)
}
  0x11   :  { %s960_s28 = smov 512   ;;  %s961_s29 = smov 32  }
  0x12   :  { %34 = dma.hbm_to_vmem [thread:$0]  %s1052_s1, 16384, %s29_s19, [#allocation6], %s960_s28, %s960_s28, %s961_s29  }
  0x13   :  { %s962_s7 = smov [#allocation2]   ;;  %s963_s9 = smov [#allocation7]  }
  0x14   :  { %s19_s8 = sshll.u32 %s962_s7, 4  ;;  %s42_s10 = sshll.u32 %s963_s9, 4  ;;  %s20_s8 = int_to_ptr.vmem [resolvable:$true] %s19_s8  ;;  %s43_s10 = int_to_ptr.vmem [resolvable:$true] %s42_s10 }
  0x15   :  { %s887_s13 = scalar_lea.hbm %s1051_s0, 256 }
  0x16   :  { %p888_p8 = scmp.ne.s32.totalorder %s1051_s0, %s887_s13  ;;  %p891_p9 = scmp.lt.u32.totalorder %s887_s13, %s1051_s0 }
  0x18   :  { %p893_p10 = pnand %p891_p9, %p888_p8 }
  0x1a   :  { %896 = shalt.err (!%p893_p10)
}
  0x1b   :  { %s897_s1 = scalar_lea.vmem %s20_s8, 256  ;;  %p902_p12 = scmp.lt.s32.totalorder %s20_s8, %s20_s8 }
  0x1c   :  { %p898_p11 = scmp.ne.s32.totalorder %s20_s8, %s897_s1  ;;  %p903_p13 = scmp.lt.s32.totalorder %s897_s1, %s897_s1 }
  0x1e   :  { %p904_p0 = por %p903_p13, %p902_p12 }
  0x20   :  { %p905_p1 = pnand %p904_p0, %p898_p11 }
  0x22   :  { %908 = shalt.err (!%p905_p1)
}
  0x23   :  { %22 = dma.hbm_to_vmem [thread:$0]  %s1051_s0, 256, %s20_s8, [#allocation3]  }
  0x24   :  { %s909_s22 = scalar_lea.hbm %s1054_s3, 8192 }
  0x25   :  { %p910_p2 = scmp.ne.s32.totalorder %s1054_s3, %s909_s22  ;;  %p913_p3 = scmp.lt.u32.totalorder %s909_s22, %s1054_s3 }
  0x27   :  { %p915_p4 = pnand %p913_p3, %p910_p2 }
  0x29   :  { %918 = shalt.err (!%p915_p4)
}
  0x2a   :  { %s919_s27 = scalar_lea.vmem %s43_s10, 8192  ;;  %p924_p6 = scmp.lt.s32.totalorder %s43_s10, %s43_s10 }
  0x2b   :  { %p920_p5 = scmp.ne.s32.totalorder %s43_s10, %s919_s27  ;;  %p925_p7 = scmp.lt.s32.totalorder %s919_s27, %s919_s27 }
  0x2d   :  { %p926_p8 = por %p925_p7, %p924_p6 }
  0x2f   :  { %p927_p9 = pnand %p926_p8, %p920_p5 }
  0x31   :  { %930 = shalt.err (!%p927_p9)
}
  0x32   :  { %s964_s0 = smov 128   ;;  %s965_s28 = smov 8  }
  0x33   :  { %48 = dma.hbm_to_vmem [thread:$0]  %s1054_s3, 8192, %s43_s10, [#allocation6], %s964_s0, %s964_s0, %s965_s28  }
  0x34   :  { %953 = dma.done.wait [#allocation3], 256  }
  0x35   :  { %954 = vsyncadd [#allocation3], 4294967040 }
  0x36   :  { %955 = dma.done.wait [#allocation6], 24576  }
  0x37   :  { %956 = vsyncadd [#allocation6], 4294942720  ;;  %v63_v0 = vld [vmem:[#allocation5 + $0x8] sm:$0xff]  ;;  %v65_v2 = vld [vmem:[#allocation5 + $0x18] sm:$0xff]  ;;  %s966_s8 = smov [#allocation8]  }
  0x38   :  { %v67_v1 = vld [vmem:[#allocation5 + $0x28] sm:$0xff]  ;;  %v69_v4 = vld [vmem:[#allocation5 + $0x38] sm:$0xff]  ;;  %v62_v5 = vld [vmem:[#allocation5] sm:$0xff]  ;;  %s576_s9 = sshll.u32 %s966_s8, 4  ;;  %s577_s9 = int_to_ptr.vmem [resolvable:$true] %s576_s9 }
  0x39   :  { %v657_v3 = vpack.c.bf16 %v67_v1, %v63_v0  ;;  %v66_v6 = vld [vmem:[#allocation5 + $0x20] sm:$0xff]  ;;  %v721_v7 = vpack.c.bf16 %v69_v4, %v65_v2  ;;  %v64_v9 = vld [vmem:[#allocation5 + $0x10] sm:$0xff]  ;;  %v71_v11 = vld [vmem:[#allocation5 + $0x48] sm:$0xff]  ;;  %s931_s10 = scalar_lea.vmem %s577_s9, 128  ;;  %p936_p11 = scmp.lt.s32.totalorder %s577_s9, %s577_s9 }
  0x3a   :  { %v659_v8 = vpack.c.bf16 %v66_v6, %v62_v5  ;;  %v68_v10 = vld [vmem:[#allocation5 + $0x30] sm:$0xff]  ;;  %v75_v13 = vld [vmem:[#allocation5 + $0x68] sm:$0xff]  ;;  %v73_v14 = vld [vmem:[#allocation5 + $0x58] sm:$0xff]  ;;  %p932_p10 = scmp.ne.s32.totalorder %s577_s9, %s931_s10  ;;  %p937_p12 = scmp.lt.s32.totalorder %s931_s10, %s931_s10 }
  0x3b   :  { %658 = vmatprep.subr.bf16.mxu0 %v657_v3  ;;  %v723_v12 = vpack.c.bf16 %v68_v10, %v64_v9  ;;  %v77_v15 = vld [vmem:[#allocation5 + $0x78] sm:$0xff]  ;;  %722 = vmatprep.subr.bf16.mxu1 %v721_v7  ;;  %v661_v16 = vpack.c.bf16 %v75_v13, %v71_v11  ;;  %v70_v18 = vld [vmem:[#allocation5 + $0x40] sm:$0xff]  ;;  %v72_v20 = vld [vmem:[#allocation5 + $0x50] sm:$0xff] }
  0x3c   :  { %660 = vmatpush1.bf16.msra.mxu0 %v659_v8  ;;  %v725_v17 = vpack.c.bf16 %v77_v15, %v73_v14  ;;  %v74_v19 = vld [vmem:[#allocation5 + $0x60] sm:$0xff]  ;;  %v76_v22 = vld [vmem:[#allocation5 + $0x70] sm:$0xff]  ;;  %v79_v23 = vld [vmem:[#allocation5 + $0x88] sm:$0xff]  ;;  %p938_p13 = por %p937_p12, %p936_p11 }
  0x3d   :  { %724 = vmatpush1.bf16.msra.mxu1 %v723_v12  ;;  %v663_v21 = vpack.c.bf16 %v74_v19, %v70_v18  ;;  %v83_v24 = vld [vmem:[#allocation5 + $0xa8] sm:$0xff]  ;;  %662 = vmatprep.subr.bf16.mxu0 %v661_v16  ;;  %v727_v25 = vpack.c.bf16 %v76_v22, %v72_v20  ;;  %v81_v27 = vld [vmem:[#allocation5 + $0x98] sm:$0xff]  ;;  %v78_v29 = vld [vmem:[#allocation5 + $0x80] sm:$0xff] }
  0x3e   :  { %726 = vmatprep.subr.bf16.mxu1 %v725_v17  ;;  %v665_v26 = vpack.c.bf16 %v83_v24, %v79_v23  ;;  %v85_v28 = vld [vmem:[#allocation5 + $0xb8] sm:$0xff]  ;;  %v82_v31 = vld [vmem:[#allocation5 + $0xa0] sm:$0xff]  ;;  %v80_v32 = vld [vmem:[#allocation5 + $0x90] sm:$0xff]  ;;  %p939_p0 = pnand %p938_p13, %p932_p10 }
  0x3f   :  { %v729_v30 = vpack.c.bf16 %v85_v28, %v81_v27  ;;  %v84_v33 = vld [vmem:[#allocation5 + $0xb0] sm:$0xff]  ;;  %v667_v34 = vpack.c.bf16 %v82_v31, %v78_v29  ;;  %v87_v35 = vld [vmem:[#allocation5 + $0xc8] sm:$0xff]  ;;  %v89_v37 = vld [vmem:[#allocation5 + $0xd8] sm:$0xff] }
  0x40   :  { %664 = vmatpush1.bf16.msra.mxu0 %v663_v21  ;;  %v91_v36 = vld [vmem:[#allocation5 + $0xe8] sm:$0xff]  ;;  %v731_v38 = vpack.c.bf16 %v84_v33, %v80_v32  ;;  %v93_v40 = vld [vmem:[#allocation5 + $0xf8] sm:$0xff]  ;;  %v86_v41 = vld [vmem:[#allocation5 + $0xc0] sm:$0xff] }
  0x41   :  { %728 = vmatpush1.bf16.msra.mxu1 %v727_v25  ;;  %666 = vmatprep.subr.bf16.mxu0 %v665_v26  ;;  %v669_v39 = vpack.c.bf16 %v91_v36, %v87_v35  ;;  %v90_v42 = vld [vmem:[#allocation5 + $0xe0] sm:$0xff]  ;;  %v733_v43 = vpack.c.bf16 %v93_v40, %v89_v37  ;;  %v88_v44 = vld [vmem:[#allocation5 + $0xd0] sm:$0xff]  ;;  %v95_v46 = vld [vmem:[#allocation5 + $0x108] sm:$0xff] }
  0x42   :  { %730 = vmatprep.subr.bf16.mxu1 %v729_v30  ;;  %v92_v45 = vld [vmem:[#allocation5 + $0xf0] sm:$0xff]  ;;  %v99_v47 = vld [vmem:[#allocation5 + $0x128] sm:$0xff]  ;;  %v97_v48 = vld [vmem:[#allocation5 + $0x118] sm:$0xff]  ;;  %v671_v50 = vpack.c.bf16 %v90_v42, %v86_v41 }
  0x43   :  { %v101_v49 = vld [vmem:[#allocation5 + $0x138] sm:$0xff]  ;;  %v735_v51 = vpack.c.bf16 %v92_v45, %v88_v44  ;;  %v673_v52 = vpack.c.bf16 %v99_v47, %v95_v46  ;;  %v94_v53 = vld [vmem:[#allocation5 + $0x100] sm:$0xff]  ;;  %v96_v55 = vld [vmem:[#allocation5 + $0x110] sm:$0xff] }
  0x44   :  { %668 = vmatpush1.bf16.msra.mxu0 %v667_v34  ;;  %v98_v54 = vld [vmem:[#allocation5 + $0x120] sm:$0xff]  ;;  %v737_v56 = vpack.c.bf16 %v101_v49, %v97_v48  ;;  %v100_v57 = vld [vmem:[#allocation5 + $0x130] sm:$0xff]  ;;  %v103_v58 = vld [vmem:[#allocation5 + $0x148] sm:$0xff] }
  0x45   :  { %732 = vmatpush1.bf16.msra.mxu1 %v731_v38  ;;  %670 = vmatprep.subr.bf16.mxu0 %v669_v39  ;;  %v107_v59 = vld [vmem:[#allocation5 + $0x168] sm:$0xff]  ;;  %v105_v60 = vld [vmem:[#allocation5 + $0x158] sm:$0xff]  ;;  %v675_v62 = vpack.c.bf16 %v98_v54, %v94_v53  ;;  %v739_v63 = vpack.c.bf16 %v100_v57, %v96_v55  ;;  %v102_v1 = vld [vmem:[#allocation5 + $0x140] sm:$0xff] }
  0x46   :  { %734 = vmatprep.subr.bf16.mxu1 %v733_v43  ;;  %v109_v61 = vld [vmem:[#allocation5 + $0x178] sm:$0xff]  ;;  %v677_v0 = vpack.c.bf16 %v107_v59, %v103_v58  ;;  %v106_v2 = vld [vmem:[#allocation5 + $0x160] sm:$0xff]  ;;  %v104_v3 = vld [vmem:[#allocation5 + $0x150] sm:$0xff] }
  0x47   :  { %v741_v4 = vpack.c.bf16 %v109_v61, %v105_v60  ;;  %v108_v5 = vld [vmem:[#allocation5 + $0x170] sm:$0xff]  ;;  %v111_v6 = vld [vmem:[#allocation5 + $0x188] sm:$0xff]  ;;  %v113_v8 = vld [vmem:[#allocation5 + $0x198] sm:$0xff]  ;;  %v679_v10 = vpack.c.bf16 %v106_v2, %v102_v1 }
  0x48   :  { %672 = vmatpush1.bf16.msra.mxu0 %v671_v50  ;;  %v115_v7 = vld [vmem:[#allocation5 + $0x1a8] sm:$0xff]  ;;  %v117_v9 = vld [vmem:[#allocation5 + $0x1b8] sm:$0xff]  ;;  %v743_v11 = vpack.c.bf16 %v108_v5, %v104_v3  ;;  %v110_v13 = vld [vmem:[#allocation5 + $0x180] sm:$0xff] }
  0x49   :  { %736 = vmatpush1.bf16.msra.mxu1 %v735_v51  ;;  %674 = vmatprep.subr.bf16.mxu0 %v673_v52  ;;  %v681_v12 = vpack.c.bf16 %v115_v7, %v111_v6  ;;  %v114_v14 = vld [vmem:[#allocation5 + $0x1a0] sm:$0xff]  ;;  %v112_v15 = vld [vmem:[#allocation5 + $0x190] sm:$0xff]  ;;  %v745_v16 = vpack.c.bf16 %v117_v9, %v113_v8  ;;  %v119_v18 = vld [vmem:[#allocation5 + $0x1c8] sm:$0xff] }
  0x4a   :  { %738 = vmatprep.subr.bf16.mxu1 %v737_v56  ;;  %v116_v17 = vld [vmem:[#allocation5 + $0x1b0] sm:$0xff]  ;;  %v123_v19 = vld [vmem:[#allocation5 + $0x1e8] sm:$0xff]  ;;  %v121_v20 = vld [vmem:[#allocation5 + $0x1d8] sm:$0xff]  ;;  %v683_v22 = vpack.c.bf16 %v114_v14, %v110_v13 }
  0x4b   :  { %v125_v21 = vld [vmem:[#allocation5 + $0x1f8] sm:$0xff]  ;;  %v747_v23 = vpack.c.bf16 %v116_v17, %v112_v15  ;;  %v685_v24 = vpack.c.bf16 %v123_v19, %v119_v18  ;;  %v118_v25 = vld [vmem:[#allocation5 + $0x1c0] sm:$0xff]  ;;  %v120_v27 = vld [vmem:[#allocation5 + $0x1d0] sm:$0xff] }
  0x4c   :  { %676 = vmatpush1.bf16.msra.mxu0 %v675_v62  ;;  %v122_v26 = vld [vmem:[#allocation5 + $0x1e0] sm:$0xff]  ;;  %v749_v28 = vpack.c.bf16 %v125_v21, %v121_v20  ;;  %v124_v29 = vld [vmem:[#allocation5 + $0x1f0] sm:$0xff]  ;;  %v127_v30 = vld [vmem:[#allocation5 + $0x208] sm:$0xff] }
  0x4d   :  { %740 = vmatpush1.bf16.msra.mxu1 %v739_v63  ;;  %678 = vmatprep.subr.bf16.mxu0 %v677_v0  ;;  %v131_v31 = vld [vmem:[#allocation5 + $0x228] sm:$0xff]  ;;  %v129_v32 = vld [vmem:[#allocation5 + $0x218] sm:$0xff]  ;;  %v687_v34 = vpack.c.bf16 %v122_v26, %v118_v25  ;;  %v751_v35 = vpack.c.bf16 %v124_v29, %v120_v27  ;;  %v126_v37 = vld [vmem:[#allocation5 + $0x200] sm:$0xff] }
  0x4e   :  { %742 = vmatprep.subr.bf16.mxu1 %v741_v4  ;;  %v133_v33 = vld [vmem:[#allocation5 + $0x238] sm:$0xff]  ;;  %v689_v36 = vpack.c.bf16 %v131_v31, %v127_v30  ;;  %v130_v38 = vld [vmem:[#allocation5 + $0x220] sm:$0xff]  ;;  %v128_v39 = vld [vmem:[#allocation5 + $0x210] sm:$0xff] }
  0x4f   :  { %v753_v40 = vpack.c.bf16 %v133_v33, %v129_v32  ;;  %v132_v41 = vld [vmem:[#allocation5 + $0x230] sm:$0xff]  ;;  %v135_v42 = vld [vmem:[#allocation5 + $0x248] sm:$0xff]  ;;  %v137_v44 = vld [vmem:[#allocation5 + $0x258] sm:$0xff]  ;;  %v691_v46 = vpack.c.bf16 %v130_v38, %v126_v37 }
  0x50   :  { %680 = vmatpush1.bf16.msra.mxu0 %v679_v10  ;;  %v139_v43 = vld [vmem:[#allocation5 + $0x268] sm:$0xff]  ;;  %v141_v45 = vld [vmem:[#allocation5 + $0x278] sm:$0xff]  ;;  %v755_v47 = vpack.c.bf16 %v132_v41, %v128_v39  ;;  %v134_v49 = vld [vmem:[#allocation5 + $0x240] sm:$0xff] }
  0x51   :  { %744 = vmatpush1.bf16.msra.mxu1 %v743_v11  ;;  %682 = vmatprep.subr.bf16.mxu0 %v681_v12  ;;  %v693_v48 = vpack.c.bf16 %v139_v43, %v135_v42  ;;  %v138_v50 = vld [vmem:[#allocation5 + $0x260] sm:$0xff]  ;;  %v136_v51 = vld [vmem:[#allocation5 + $0x250] sm:$0xff]  ;;  %v757_v52 = vpack.c.bf16 %v141_v45, %v137_v44  ;;  %v143_v54 = vld [vmem:[#allocation5 + $0x288] sm:$0xff] }
  0x52   :  { %746 = vmatprep.subr.bf16.mxu1 %v745_v16  ;;  %v140_v53 = vld [vmem:[#allocation5 + $0x270] sm:$0xff]  ;;  %v147_v55 = vld [vmem:[#allocation5 + $0x2a8] sm:$0xff]  ;;  %v145_v56 = vld [vmem:[#allocation5 + $0x298] sm:$0xff]  ;;  %v695_v58 = vpack.c.bf16 %v138_v50, %v134_v49 }
  0x53   :  { %v149_v57 = vld [vmem:[#allocation5 + $0x2b8] sm:$0xff]  ;;  %v759_v59 = vpack.c.bf16 %v140_v53, %v136_v51  ;;  %v697_v60 = vpack.c.bf16 %v147_v55, %v143_v54  ;;  %v142_v61 = vld [vmem:[#allocation5 + $0x280] sm:$0xff]  ;;  %v144_v63 = vld [vmem:[#allocation5 + $0x290] sm:$0xff] }
  0x54   :  { %684 = vmatpush1.bf16.msra.mxu0 %v683_v22  ;;  %v146_v62 = vld [vmem:[#allocation5 + $0x2a0] sm:$0xff]  ;;  %v761_v0 = vpack.c.bf16 %v149_v57, %v145_v56  ;;  %v148_v1 = vld [vmem:[#allocation5 + $0x2b0] sm:$0xff]  ;;  %v151_v2 = vld [vmem:[#allocation5 + $0x2c8] sm:$0xff] }
  0x55   :  { %748 = vmatpush1.bf16.msra.mxu1 %v747_v23  ;;  %686 = vmatprep.subr.bf16.mxu0 %v685_v24  ;;  %v155_v3 = vld [vmem:[#allocation5 + $0x2e8] sm:$0xff]  ;;  %v153_v4 = vld [vmem:[#allocation5 + $0x2d8] sm:$0xff]  ;;  %v699_v6 = vpack.c.bf16 %v146_v62, %v142_v61  ;;  %v150_v7 = vld [vmem:[#allocation5 + $0x2c0] sm:$0xff]  ;;  %v763_v8 = vpack.c.bf16 %v148_v1, %v144_v63 }
  0x56   :  { %750 = vmatprep.subr.bf16.mxu1 %v749_v28  ;;  %v157_v5 = vld [vmem:[#allocation5 + $0x2f8] sm:$0xff]  ;;  %v701_v9 = vpack.c.bf16 %v155_v3, %v151_v2  ;;  %v154_v10 = vld [vmem:[#allocation5 + $0x2e0] sm:$0xff]  ;;  %v152_v11 = vld [vmem:[#allocation5 + $0x2d0] sm:$0xff] }
  0x57   :  { %v156_v12 = vld [vmem:[#allocation5 + $0x2f0] sm:$0xff]  ;;  %v765_v13 = vpack.c.bf16 %v157_v5, %v153_v4  ;;  %v159_v14 = vld [vmem:[#allocation5 + $0x308] sm:$0xff]  ;;  %v61_v16 = vld [vmem:[#allocation2 + $0x8] sm:$0xff]  ;;  %v703_v19 = vpack.c.bf16 %v154_v10, %v150_v7 }
  0x58   :  { %688 = vmatpush1.bf16.msra.mxu0 %v687_v34  ;;  %v163_v15 = vld [vmem:[#allocation5 + $0x328] sm:$0xff]  ;;  %v161_v17 = vld [vmem:[#allocation5 + $0x318] sm:$0xff]  ;;  %276 = vmatprep.mubr.f32.mxu0 %v61_v16  ;;  %v767_v20 = vpack.c.bf16 %v156_v12, %v152_v11  ;;  %v158_v22 = vld [vmem:[#allocation5 + $0x300] sm:$0xff] }
  0x59   :  { %752 = vmatpush1.bf16.msra.mxu1 %v751_v35  ;;  %690 = vmatprep.subr.bf16.mxu0 %v689_v36  ;;  %v165_v18 = vld [vmem:[#allocation5 + $0x338] sm:$0xff]  ;;  %v705_v21 = vpack.c.bf16 %v163_v15, %v159_v14  ;;  %v162_v23 = vld [vmem:[#allocation5 + $0x320] sm:$0xff]  ;;  %v160_v24 = vld [vmem:[#allocation5 + $0x310] sm:$0xff] }
  0x5a   :  { %754 = vmatprep.subr.bf16.mxu1 %v753_v40  ;;  %347 = vmatprep.mubr.f32.mxu1 %v61_v16  ;;  %v769_v25 = vpack.c.bf16 %v165_v18, %v161_v17  ;;  %v164_v26 = vld [vmem:[#allocation5 + $0x330] sm:$0xff]  ;;  %v167_v27 = vld [vmem:[#allocation5 + $0x348] sm:$0xff]  ;;  %v169_v29 = vld [vmem:[#allocation5 + $0x358] sm:$0xff]  ;;  %v707_v31 = vpack.c.bf16 %v162_v23, %v158_v22 }
  0x5b   :  { %v171_v28 = vld [vmem:[#allocation5 + $0x368] sm:$0xff]  ;;  %v173_v30 = vld [vmem:[#allocation5 + $0x378] sm:$0xff]  ;;  %v771_v32 = vpack.c.bf16 %v164_v26, %v160_v24  ;;  %v166_v34 = vld [vmem:[#allocation5 + $0x340] sm:$0xff] }
  0x5c   :  { %692 = vmatpush1.bf16.msra.mxu0 %v691_v46  ;;  %v709_v33 = vpack.c.bf16 %v171_v28, %v167_v27  ;;  %v170_v35 = vld [vmem:[#allocation5 + $0x360] sm:$0xff]  ;;  %v168_v36 = vld [vmem:[#allocation5 + $0x350] sm:$0xff]  ;;  %v773_v37 = vpack.c.bf16 %v173_v30, %v169_v29  ;;  %v175_v39 = vld [vmem:[#allocation5 + $0x388] sm:$0xff] }
  0x5d   :  { %756 = vmatpush1.bf16.msra.mxu1 %v755_v47  ;;  %694 = vmatprep.subr.bf16.mxu0 %v693_v48  ;;  %v172_v38 = vld [vmem:[#allocation5 + $0x370] sm:$0xff]  ;;  %v179_v40 = vld [vmem:[#allocation5 + $0x3a8] sm:$0xff]  ;;  %v177_v41 = vld [vmem:[#allocation5 + $0x398] sm:$0xff]  ;;  %v711_v43 = vpack.c.bf16 %v170_v35, %v166_v34 }
  0x5e   :  { %758 = vmatprep.subr.bf16.mxu1 %v757_v52  ;;  %v181_v42 = vld [vmem:[#allocation5 + $0x3b8] sm:$0xff]  ;;  %v775_v44 = vpack.c.bf16 %v172_v38, %v168_v36  ;;  %v713_v45 = vpack.c.bf16 %v179_v40, %v175_v39  ;;  %v174_v46 = vld [vmem:[#allocation5 + $0x380] sm:$0xff]  ;;  %v176_v48 = vld [vmem:[#allocation5 + $0x390] sm:$0xff] }
  0x5f   :  { %v178_v47 = vld [vmem:[#allocation5 + $0x3a0] sm:$0xff]  ;;  %v777_v49 = vpack.c.bf16 %v181_v42, %v177_v41  ;;  %v180_v50 = vld [vmem:[#allocation5 + $0x3b0] sm:$0xff]  ;;  %v183_v51 = vld [vmem:[#allocation5 + $0x3c8] sm:$0xff] }
  0x60   :  { %696 = vmatpush1.bf16.msra.mxu0 %v695_v58  ;;  %v187_v52 = vld [vmem:[#allocation5 + $0x3e8] sm:$0xff]  ;;  %v185_v53 = vld [vmem:[#allocation5 + $0x3d8] sm:$0xff]  ;;  %v715_v55 = vpack.c.bf16 %v178_v47, %v174_v46  ;;  %v779_v56 = vpack.c.bf16 %v180_v50, %v176_v48  ;;  %v182_v58 = vld [vmem:[#allocation5 + $0x3c0] sm:$0xff] }
  0x61   :  { %760 = vmatpush1.bf16.msra.mxu1 %v759_v59  ;;  %698 = vmatprep.subr.bf16.mxu0 %v697_v60  ;;  %v189_v54 = vld [vmem:[#allocation5 + $0x3f8] sm:$0xff]  ;;  %v717_v57 = vpack.c.bf16 %v187_v52, %v183_v51  ;;  %v186_v59 = vld [vmem:[#allocation5 + $0x3e0] sm:$0xff]  ;;  %v184_v60 = vld [vmem:[#allocation5 + $0x3d0] sm:$0xff] }
  0x62   :  { %762 = vmatprep.subr.bf16.mxu1 %v761_v0  ;;  %v781_v61 = vpack.c.bf16 %v189_v54, %v185_v53  ;;  %v188_v62 = vld [vmem:[#allocation5 + $0x3f0] sm:$0xff]  ;;  %v374_v63 = vld [vmem:[#allocation7 + $0x80] sm:$0xff]  ;;  %v375_v0 = vld [vmem:[#allocation7 + $0x88] sm:$0xff]  ;;  %v719_v3 = vpack.c.bf16 %v186_v59, %v182_v58 }
  0x63   :  { %v406_v1 = vld [vmem:[#allocation7 + $0x180] sm:$0xff]  ;;  %v407_v2 = vld [vmem:[#allocation7 + $0x188] sm:$0xff]  ;;  %v783_v4 = vpack.c.bf16 %v188_v62, %v184_v60  ;;  %v785_v5 = vpack.c.bf16 %v375_v0, %v374_v63  ;;  %v376_v11 = vld [vmem:[#allocation7 + $0x90] sm:$0xff] }
  0x64   :  { %700 = vmatpush1.bf16.msra.mxu0 %v699_v6  ;;  %v358_v6 = vld [vmem:[#allocation7] sm:$0xff]  ;;  %v359_v7 = vld [vmem:[#allocation7 + $0x8] sm:$0xff]  ;;  %v377_v12 = vld [vmem:[#allocation7 + $0x98] sm:$0xff] }
  0x65   :  { %764 = vmatpush1.bf16.msra.mxu1 %v763_v8  ;;  %702 = vmatprep.subr.bf16.mxu0 %v701_v9  ;;  %v390_v8 = vld [vmem:[#allocation7 + $0x100] sm:$0xff]  ;;  %v817_v9 = vpack.c.bf16 %v407_v2, %v406_v1  ;;  %v391_v10 = vld [vmem:[#allocation7 + $0x108] sm:$0xff]  ;;  %v409_v14 = vld [vmem:[#allocation7 + $0x198] sm:$0xff]  ;;  %v787_v16 = vpack.c.bf16 %v359_v7, %v358_v6  ;;  %v789_v18 = vpack.c.bf16 %v377_v12, %v376_v11 }
  0x66   :  { %766 = vmatprep.subr.bf16.mxu1 %v765_v13  ;;  %v408_v13 = vld [vmem:[#allocation7 + $0x190] sm:$0xff]  ;;  %v819_v17 = vpack.c.bf16 %v391_v10, %v390_v8  ;;  %v393_v23 = vld [vmem:[#allocation7 + $0x118] sm:$0xff]  ;;  %v378_v24 = vld [vmem:[#allocation7 + $0xa0] sm:$0xff] }
  0x67   :  { %v60_v15 = vld [vmem:[#allocation2] sm:$0xff]  ;;  %v821_v22 = vpack.c.bf16 %v409_v14, %v408_v13  ;;  %v410_v26 = vld [vmem:[#allocation7 + $0x1a0] sm:$0xff]  ;;  %v411_v27 = vld [vmem:[#allocation7 + $0x1a8] sm:$0xff] }
  0x68   :  { %704 = vmatpush1.bf16.msra.mxu0 %v703_v19  ;;  %v360_v19 = vld [vmem:[#allocation7 + $0x10] sm:$0xff]  ;;  %v825_v34 = vpack.c.bf16 %v411_v27, %v410_v26  ;;  %v395_v35 = vld [vmem:[#allocation7 + $0x128] sm:$0xff]  ;;  %v413_v39 = vld [vmem:[#allocation7 + $0x1b8] sm:$0xff] }
  0x69   :  { %768 = vmatpush1.bf16.msra.mxu1 %v767_v20  ;;  %706 = vmatprep.subr.bf16.mxu0 %v705_v21  ;;  %v361_v20 = vld [vmem:[#allocation7 + $0x18] sm:$0xff]  ;;  %v392_v21 = vld [vmem:[#allocation7 + $0x110] sm:$0xff]  ;;  %v382_v50 = vld [vmem:[#allocation7 + $0xc0] sm:$0xff] }
  0x6a   :  { %770 = vmatprep.subr.bf16.mxu1 %v769_v25  ;;  %v379_v25 = vld [vmem:[#allocation7 + $0xa8] sm:$0xff]  ;;  %v791_v28 = vpack.c.bf16 %v361_v20, %v360_v19  ;;  %v823_v29 = vpack.c.bf16 %v393_v23, %v392_v21  ;;  %v380_v36 = vld [vmem:[#allocation7 + $0xb0] sm:$0xff]  ;;  %v397_v47 = vld [vmem:[#allocation7 + $0x138] sm:$0xff] }
  0x6b   :  { %v793_v30 = vpack.c.bf16 %v379_v25, %v378_v24  ;;  %v412_v38 = vld [vmem:[#allocation7 + $0x1b0] sm:$0xff]  ;;  %v383_v51 = vld [vmem:[#allocation7 + $0xc8] sm:$0xff]  ;;  %v414_v52 = vld [vmem:[#allocation7 + $0x1c0] sm:$0xff] }
  0x6c   :  { %708 = vmatpush1.bf16.msra.mxu0 %v707_v31  ;;  %v362_v31 = vld [vmem:[#allocation7 + $0x20] sm:$0xff]  ;;  %v396_v46 = vld [vmem:[#allocation7 + $0x130] sm:$0xff]  ;;  %v801_v53 = vpack.c.bf16 %v383_v51, %v382_v50  ;;  %v415_v54 = vld [vmem:[#allocation7 + $0x1c8] sm:$0xff] }
  0x6d   :  { %772 = vmatpush1.bf16.msra.mxu1 %v771_v32  ;;  %710 = vmatprep.subr.bf16.mxu0 %v709_v33  ;;  %v363_v32 = vld [vmem:[#allocation7 + $0x28] sm:$0xff]  ;;  %v394_v33 = vld [vmem:[#allocation7 + $0x120] sm:$0xff]  ;;  %v384_v62 = vld [vmem:[#allocation7 + $0xd0] sm:$0xff] }
  0x6e   :  { %774 = vmatprep.subr.bf16.mxu1 %v773_v37  ;;  %v381_v37 = vld [vmem:[#allocation7 + $0xb8] sm:$0xff]  ;;  %v795_v40 = vpack.c.bf16 %v363_v32, %v362_v31  ;;  %v827_v41 = vpack.c.bf16 %v395_v35, %v394_v33  ;;  %v398_v58 = vld [vmem:[#allocation7 + $0x140] sm:$0xff]  ;;  %v399_v60 = vld [vmem:[#allocation7 + $0x148] sm:$0xff] }
  0x6f   :  { %v797_v42 = vpack.c.bf16 %v381_v37, %v380_v36  ;;  %v385_v63 = vld [vmem:[#allocation7 + $0xd8] sm:$0xff]  ;;  %v416_v0 = vld [vmem:[#allocation7 + $0x1d0] sm:$0xff]  ;;  %v386_v10 = vld [vmem:[#allocation7 + $0xe0] sm:$0xff] }
  0x70   :  { %712 = vmatpush1.bf16.msra.mxu0 %v711_v43  ;;  %v364_v43 = vld [vmem:[#allocation7 + $0x30] sm:$0xff]  ;;  %v805_v1 = vpack.c.bf16 %v385_v63, %v384_v62  ;;  %v417_v2 = vld [vmem:[#allocation7 + $0x1d8] sm:$0xff]  ;;  %v387_v11 = vld [vmem:[#allocation7 + $0xe8] sm:$0xff] }
  0x71   :  { %776 = vmatpush1.bf16.msra.mxu1 %v775_v44  ;;  %714 = vmatprep.subr.bf16.mxu0 %v713_v45  ;;  %v365_v44 = vld [vmem:[#allocation7 + $0x38] sm:$0xff]  ;;  %v829_v45 = vpack.c.bf16 %v413_v39, %v412_v38  ;;  %v400_v7 = vld [vmem:[#allocation7 + $0x150] sm:$0xff]  ;;  %v418_v12 = vld [vmem:[#allocation7 + $0x1e0] sm:$0xff]  ;;  %v809_v13 = vpack.c.bf16 %v387_v11, %v386_v10 }
  0x72   :  { %778 = vmatprep.subr.bf16.mxu1 %v777_v49  ;;  %v799_v48 = vpack.c.bf16 %v365_v44, %v364_v43  ;;  %v831_v49 = vpack.c.bf16 %v397_v47, %v396_v46  ;;  %v401_v8 = vld [vmem:[#allocation7 + $0x158] sm:$0xff]  ;;  %v419_v14 = vld [vmem:[#allocation7 + $0x1e8] sm:$0xff]  ;;  %v402_v19 = vld [vmem:[#allocation7 + $0x160] sm:$0xff] }
  0x73   :  { %v403_v20 = vld [vmem:[#allocation7 + $0x168] sm:$0xff]  ;;  %v388_v21 = vld [vmem:[#allocation7 + $0xf0] sm:$0xff]  ;;  %v389_v23 = vld [vmem:[#allocation7 + $0xf8] sm:$0xff] }
  0x74   :  { %716 = vmatpush1.bf16.msra.mxu0 %v715_v55  ;;  %v833_v55 = vpack.c.bf16 %v415_v54, %v414_v52  ;;  %v420_v24 = vld [vmem:[#allocation7 + $0x1f0] sm:$0xff]  ;;  %v421_v25 = vld [vmem:[#allocation7 + $0x1f8] sm:$0xff]  ;;  %v813_v26 = vpack.c.bf16 %v389_v23, %v388_v21 }
  0x75   :  { %780 = vmatpush1.bf16.msra.mxu1 %v779_v56  ;;  %718 = vmatprep.subr.bf16.mxu0 %v717_v57  ;;  %v366_v56 = vld [vmem:[#allocation7 + $0x40] sm:$0xff]  ;;  %v367_v57 = vld [vmem:[#allocation7 + $0x48] sm:$0xff]  ;;  %v845_v27 = vpack.c.bf16 %v421_v25, %v420_v24  ;;  %v405_v32 = vld [vmem:[#allocation7 + $0x178] sm:$0xff] }
  0x76   :  { %782 = vmatprep.subr.bf16.mxu1 %v781_v61  ;;  %v803_v59 = vpack.c.bf16 %v367_v57, %v366_v56  ;;  %v835_v61 = vpack.c.bf16 %v399_v60, %v398_v58  ;;  %v190_v37 = vld [vmem:[%s1053_s2] sm:$0xf] }
  0x78   :  { %720 = vmatpush1.bf16.msra.mxu0 %v719_v3  ;;  %v368_v3 = vld [vmem:[#allocation7 + $0x50] sm:$0xff] }
  0x79   :  { %784 = vmatpush1.bf16.msra.mxu1 %v783_v4  ;;  %786 = vmatprep.subr.bf16.mxu0 %v785_v5  ;;  %v369_v4 = vld [vmem:[#allocation7 + $0x58] sm:$0xff]  ;;  %v837_v5 = vpack.c.bf16 %v417_v2, %v416_v0 }
  0x7a   :  { %818 = vmatprep.subr.bf16.mxu1 %v817_v9  ;;  %v807_v6 = vpack.c.bf16 %v369_v4, %v368_v3  ;;  %v839_v9 = vpack.c.bf16 %v401_v8, %v400_v7 }
  0x7b   :  { %277 = vmatmul.mubr.f32.vlgmr.msra.gmra.mrb[0].mxu0 %v60_v15 }
  0x7c   :  { %348 = vmatmul.mubr.f32.vlgmr.msra.gmra.mrb[0].mxu1 %v60_v15  ;;  %788 = vmatpush3.bf16.msra.mxu0 %v787_v16  ;;  %v370_v15 = vld [vmem:[#allocation7 + $0x60] sm:$0xff]  ;;  %v371_v16 = vld [vmem:[#allocation7 + $0x68] sm:$0xff] }
  0x7d   :  { %820 = vmatpush3.bf16.msra.mxu1 %v819_v17  ;;  %790 = vmatprep.subr.bf16.mxu0 %v789_v18  ;;  %v841_v17 = vpack.c.bf16 %v419_v14, %v418_v12  ;;  %v811_v18 = vpack.c.bf16 %v371_v16, %v370_v15 }
  0x7e   :  { %822 = vmatprep.subr.bf16.mxu1 %v821_v22  ;;  %v843_v22 = vpack.c.bf16 %v403_v20, %v402_v19 }
  0x80   :  { %792 = vmatpush3.bf16.msra.mxu0 %v791_v28  ;;  %v372_v28 = vld [vmem:[#allocation7 + $0x70] sm:$0xff] }
  0x81   :  { %824 = vmatpush3.bf16.msra.mxu1 %v823_v29  ;;  %794 = vmatprep.subr.bf16.mxu0 %v793_v30  ;;  %v373_v29 = vld [vmem:[#allocation7 + $0x78] sm:$0xff]  ;;  %v404_v30 = vld [vmem:[#allocation7 + $0x170] sm:$0xff] }
  0x82   :  { %826 = vmatprep.subr.bf16.mxu1 %v825_v34  ;;  %v815_v31 = vpack.c.bf16 %v373_v29, %v372_v28  ;;  %v847_v33 = vpack.c.bf16 %v405_v32, %v404_v30  ;;  %v192_v34 = vlaneseq }
  0x84   :  { %796 = vmatpush3.bf16.msra.mxu0 %v795_v40  ;;  %v193_v35 = vshrl.u32 %v192_v34, 7 }
  0x85   :  { %828 = vmatpush3.bf16.msra.mxu1 %v827_v41  ;;  %798 = vmatprep.subr.bf16.mxu0 %v797_v42 }
  0x86   :  { %830 = vmatprep.subr.bf16.mxu1 %v829_v45  ;;  %v194_v36 = vsub.s32 0, %v193_v35  ;;  %v202_v38 = vsub.s32 2, %v193_v35  ;;  %v198_v39 = vsub.s32 1, %v193_v35  ;;  %v206_v40 = vsub.s32 3, %v193_v35 }
  0x88   :  { %800 = vmatpush3.bf16.msra.mxu0 %v799_v48  ;;  %v195_v41 = vrot.slane %v190_v37, %v194_v36  ;;  %v203_v42 = vrot.slane %v190_v37, %v202_v38  ;;  %v199_v43 = vrot.slane %v190_v37, %v198_v39  ;;  %v207_v44 = vrot.slane %v190_v37, %v206_v40 }
  0x89   :  { %832 = vmatpush3.bf16.msra.mxu1 %v831_v49  ;;  %802 = vmatprep.subr.bf16.mxu0 %v801_v53 }
  0x8a   :  { %834 = vmatprep.subr.bf16.mxu1 %v833_v55 }
  0x8c   :  { %804 = vmatpush3.bf16.msra.mxu0 %v803_v59  ;;  %v586_v59 = vld [vmem:[%s1055_s4] ss:$0 sm:$0xff] }
  0x8d   :  { %836 = vmatpush3.bf16.msra.mxu1 %v835_v61  ;;  %806 = vmatprep.subr.bf16.mxu0 %v805_v1 }
  0x8e   :  { %838 = vmatprep.subr.bf16.mxu1 %v837_v5 }
  0x90   :  { %808 = vmatpush3.bf16.msra.mxu0 %v807_v6 }
  0x91   :  { %840 = vmatpush3.bf16.msra.mxu1 %v839_v9  ;;  %810 = vmatprep.subr.bf16.mxu0 %v809_v13 }
  0x92   :  { %842 = vmatprep.subr.bf16.mxu1 %v841_v17 }
  0x94   :  { %812 = vmatpush3.bf16.msra.mxu0 %v811_v18 }
  0x95   :  { %844 = vmatpush3.bf16.msra.mxu1 %v843_v22  ;;  %814 = vmatprep.subr.bf16.mxu0 %v813_v26 }
  0x96   :  { %846 = vmatprep.subr.bf16.mxu1 %v845_v27 }
  0x98   :  { %816 = vmatpush3.bf16.msra.mxu0 %v815_v31 }
  0x99   :  { %848 = vmatpush3.bf16.msra.mxu1 %v847_v33 }
 0x14e   :  { %v278_v45 = vpop.f32.mrb[0].mxu0 }
 0x14f   :  { %v279_v46 = vadd.f32 %v278_v45, %v195_v41  ;;  %v349_v47 = vpop.f32.mrb[0].mxu1  ;;  %v280_v48 = vpop.f32.mrb[1].mxu0 }
 0x150   :  { %v350_v49 = vadd.f32 %v349_v47, %v203_v42  ;;  %v281_v50 = vadd.f32 %v280_v48, %v199_v43  ;;  %v351_v51 = vpop.f32.mrb[1].mxu1 }
 0x151   :  { %857 = vtanh.f32 %v279_v46  ;;  %v352_v52 = vadd.f32 %v351_v51, %v207_v44 }
 0x152   :  { %859 = vtanh.f32 %v350_v49 }
 0x153   :  { %861 = vtanh.f32 %v281_v50 }
 0x154   :  { %863 = vtanh.f32 %v352_v52 }
 0x15b   :  { %v858_v53 = vpop.eup %857 }
 0x15c   :  { %v860_v54 = vpop.eup %859 }
 0x15d   :  { %v862_v55 = vpop.eup %861 }
 0x15e   :  { %v864_v56 = vpop.eup %863  ;;  %493 = vmatprep.mubr.f32.mxu0 %v862_v55 }
 0x15f   :  { %563 = vmatprep.mubr.f32.mxu1 %v864_v56  ;;  %494 = vmatmul.mubr.f32.vlgmr.msra.gmra.mrb[2].mxu0 %v858_v53 }
 0x160   :  { %564 = vmatmul.mubr.f32.vlgmr.msra.gmra.mrb[2].mxu1 %v860_v54 }
 0x232   :  { %v619_v57 = vpop.f32.mrb[2].mxu0 }
 0x233   :  { %v654_v58 = vpop.f32.mrb[2].mxu1  ;;  %v620_v60 = vpop.f32.mrb[3].mxu0 }
 0x234   :  { %v621_v61 = vadd.f32 %v620_v60, %v619_v57  ;;  %v655_v62 = vpop.f32.mrb[3].mxu1 }
 0x235   :  { %v656_v63 = vadd.f32 %v655_v62, %v654_v58 }
 0x236   :  { %v496_v0 = vadd.f32 %v621_v61, %v586_v59 }
 0x238   :  { %v566_v1 = vadd.f32 %v656_v63, %v496_v0 }
 0x23a   :  { %569 = vst [vmem:[#allocation8] sm:$0xff] %v566_v1 }
 0x23b   :  { %942 = shalt.err (!%p939_p0)
}
 0x23c   :  { %s943_s4 = scalar_lea.hbm %s1056_s5, 128 }
 0x23d   :  { %p944_p1 = scmp.ne.s32.totalorder %s1056_s5, %s943_s4  ;;  %p947_p2 = scmp.lt.u32.totalorder %s943_s4, %s1056_s5 }
 0x23f   :  { %p949_p3 = pnand %p947_p2, %p944_p1 }
 0x241   :  { %952 = shalt.err (!%p949_p3)
}
 0x242   :  { %579 = dma.vmem_to_hbm [thread:$0]  %s577_s9, 128, %s1056_s5, [#allocation4]  }
 0x243   :  { %957 = dma.done.wait [#allocation4], 128  }
 0x244   :  { %958 = vsyncadd [#allocation4], 4294967168 }
 0x245   :  { %583 = vsyncpa [#allocation3], 1 }
 0x246   :  { %584 = vsyncpa [#allocation6], 1 }
 0x247   :  { %585 = vsyncpa [#allocation4], 1 }

</bundles_post_ra>
